<compile_context>
chip_gen: v7x
topology: tpu7x:2x2x1
jax: 0.10.0
libtpu: 0.0.40
codegen_flags: <defaults>
</compile_context>

<pallas_src>
import jax
import jax.numpy as jnp
from jax.experimental import pallas as pl
from jax.experimental.pallas import tpu as pltpu

_MIB = 1024 * 1024
# Pipelined per-step VMEM footprint multiplier: 2x double-buffered input block
# + 2x double-buffered output block + ~1x block of temporaries.
_PIPE_MULT = 5
# Blocks beyond a few MiB are already at the HBM roofline (measured ~85%+ at
# >= 1 MiB); capping keeps the total VMEM request modest even on 64 MiB v7x.
_BLOCK_CAP = 8 * _MIB


def _round_up(a, b):
    return -(-a // b) * b


def _tpu_vmem_and_cores():
    """Physical per-core VMEM bytes and TensorCore count (defensive defaults)."""
    vmem = 64 * _MIB          # v7x floor; v5e/v6e have 128 MiB
    cores = 1
    try:
        info = pltpu.get_tpu_info()
        vmem = int(getattr(info, "vmem_capacity_bytes", vmem)) or vmem
        for attr in ("num_cores", "core_count", "tensorcore_count", "num_tensorcores"):
            val = getattr(info, attr, None)
            if val:
                cores = max(cores, int(val))
                break
    except Exception:
        pass
    try:
        kind = jax.devices()[0].device_kind.lower()
        if "v7" in kind:      # v7x has 2 TensorCores per chip
            cores = max(cores, 2)
    except Exception:
        pass
    return vmem, cores


def _padded_row_bytes(C, HW, itemsize):
    """Padded VMEM bytes of one (C, HW) batch row, accounting for (8,128) tiling."""
    sub = 8 * max(1, 4 // itemsize)            # 8 rows f32 / 16 rows bf16 per tile
    return _round_up(C, sub) * _round_up(HW, 128) * itemsize


def _vmem_limit(block_bytes, vmem_cap):
    # Real pipelined footprint + slack for compiler scratch, clamped under the
    # physical capacity (replaces the old hard-coded 48 MiB).
    want = _PIPE_MULT * block_bytes + 8 * _MIB
    return int(min(int(vmem_cap * 0.9), max(32 * _MIB, want)))


# ---------------------------------------------------------------------------
# Kernels
# ---------------------------------------------------------------------------

def _gate_from_avg(avg, w_ref):
    """avg: (B, C, 1) f32 channel means -> sigmoid(conv1d_k3(avg)), f32.

    3-tap zero-padded cross-correlation along the channel (sublane) axis:
        y[c] = w0*avg[c-1] + w1*avg[c] + w2*avg[c+1]
    Implemented with static sublane slices + a zero row (cheaper than jnp.roll's
    slice/concat plus iota/select masks); the tensor is tiny, so this epilogue
    stays off the critical path.
    """
    w0, w1, w2 = w_ref[0], w_ref[1], w_ref[2]
    C = avg.shape[1]
    if C == 1:
        y = w1 * avg
    else:
        zero = jnp.zeros_like(avg[:, :1, :])
        prev = jnp.concatenate([zero, avg[:, : C - 1, :]], axis=1)
        nxt = jnp.concatenate([avg[:, 1:, :], zero], axis=1)
        y = w0 * prev + w1 * avg + w2 * nxt
    return jax.nn.sigmoid(y)


def _eca_fused_kernel(w_ref, x_ref, o_ref):
    # w_ref: (3,) conv taps in SMEM.  x_ref / o_ref: (Bt, C, HW) blocks in VMEM.
    # NOTE: the last batch block may be partial; its out-of-range rows hold
    # garbage (possibly NaN after sigmoid) and are dropped by the *masked*
    # writeback -- do not "optimize" this into an unmasked full-block store.
    x = x_ref[...]
    inv_hw = 1.0 / x.shape[2]
    # f32 accumulation with the widen fused into the reduction (no block-sized
    # f32 temporary for bf16 inputs).
    avg = jnp.sum(x, axis=2, keepdims=True, dtype=jnp.float32) * inv_hw
    gate = _gate_from_avg(avg, w_ref)
    # Scale runs in the input dtype (bf16 multiply for bf16 inputs); covered by
    # the bf16 test below, stays within ~1 ulp of the f32-multiply reference.
    o_ref[...] = (x * gate.astype(x.dtype)).astype(o_ref.dtype)


def _make_pool_gate_kernel(HW, hw_tile):
    need_mask = (HW % hw_tile) != 0
    inv_hw = 1.0 / HW

    def kernel(w_ref, x_ref, gate_ref):
        # grid = (N, HW tiles); the HW axis is a reduction ("arbitrary", last).
        # gate_ref (1, C, 1) f32 stays resident across the HW axis and doubles
        # as the pooling accumulator.
        h = pl.program_id(1)

        @pl.when(h == 0)
        def _init():
            gate_ref[...] = jnp.zeros_like(gate_ref)

        x = x_ref[...]                                       # (1, C, hw_tile)
        if need_mask:
            # Partial last HW tile: out-of-range lanes hold garbage; zero them
            # before accumulating.
            lane = jax.lax.broadcasted_iota(jnp.int32, x.shape, 2)
            x = jnp.where(h * hw_tile + lane < HW, x, jnp.zeros_like(x))
        gate_ref[...] += jnp.sum(x, axis=2, keepdims=True, dtype=jnp.float32)

        @pl.when(h == pl.num_programs(1) - 1)
        def _finalize():
            gate_ref[...] = _gate_from_avg(gate_ref[...] * inv_hw, w_ref)

    return kernel


def _eca_scale_kernel(gate_ref, x_ref, o_ref):
    x = x_ref[...]
    o_ref[...] = (x * gate_ref[...].astype(x.dtype)).astype(o_ref.dtype)


# ---------------------------------------------------------------------------
# Wrappers
# ---------------------------------------------------------------------------

def _eca_fused(x3, w3, N, C, HW, row_bytes, max_block_bytes, vmem_cap, n_cores,
               donate_x):
    bt = max(1, min(N, max_block_bytes // row_bytes))
    if n_cores > 1 and N > 1:
        # Balance the grid across TensorCores: step count a multiple of the
        # core count, and >= 2 steps/core when blocks stay >= ~1 MiB.
        steps = -(-N // bt)
        target = _round_up(max(steps, n_cores), n_cores)
        if N >= 2 * n_cores and row_bytes * (-(-N // (2 * n_cores))) >= _MIB:
            target = max(target, 2 * n_cores)
        target = min(target, N)
        bt = -(-N // target)
    # On single-TC v5e/v6e we keep the largest block that fits (no forced split).

    grid = (pl.cdiv(N, bt),)
    return pl.pallas_call(
        _eca_fused_kernel,
        out_shape=jax.ShapeDtypeStruct((N, C, HW), x3.dtype),
        grid_spec=pltpu.PrefetchScalarGridSpec(
            num_scalar_prefetch=0,
            grid=grid,
            in_specs=[
                pl.BlockSpec(memory_space=pltpu.MemorySpace.SMEM),  # 3 taps
                pl.BlockSpec((bt, C, HW), lambda n: (n, 0, 0)),
            ],
            out_specs=pl.BlockSpec((bt, C, HW), lambda n: (n, 0, 0)),
        ),
        compiler_params=pltpu.CompilerParams(
            dimension_semantics=("parallel",),
            vmem_limit_bytes=_vmem_limit(bt * row_bytes, vmem_cap),
        ),
        # Each block is fully consumed before writeback, so aliasing x (input
        # index 1: [w3, x3]) with output 0 is safe when the caller donates x.
        input_output_aliases={1: 0} if donate_x else {},
    )(w3, x3)


def _eca_split(x3, w3, N, C, HW, itemsize, max_block_bytes, vmem_cap, donate_x):
    # One (1, C, HW) batch row exceeds the block budget (early-stage feature
    # maps; mainly a v7x concern with 64 MiB VMEM): two HW-tiled sweeps.
    sub = 8 * max(1, 4 // itemsize)
    c_pad = _round_up(C, sub)
    hw_tile = (max_block_bytes // (c_pad * itemsize)) // 128 * 128
    hw_tile = max(128, min(hw_tile, _round_up(HW, 128)))
    n_hw = pl.cdiv(HW, hw_tile)
    block_bytes = c_pad * hw_tile * itemsize
    vmem_limit = _vmem_limit(block_bytes, vmem_cap)

    # Pass 1: pooled mean -> 3-tap conv -> sigmoid gate, (N, C, 1) f32.
    gate = pl.pallas_call(
        _make_pool_gate_kernel(HW, hw_tile),
        out_shape=jax.ShapeDtypeStruct((N, C, 1), jnp.float32),
        grid_spec=pltpu.PrefetchScalarGridSpec(
            num_scalar_prefetch=0,
            grid=(N, n_hw),
            in_specs=[
                pl.BlockSpec(memory_space=pltpu.MemorySpace.SMEM),
                pl.BlockSpec((1, C, hw_tile), lambda n, h: (n, 0, h)),
            ],
            out_specs=pl.BlockSpec((1, C, 1), lambda n, h: (n, 0, 0)),
        ),
        compiler_params=pltpu.CompilerParams(
            dimension_semantics=("parallel", "arbitrary"),
            vmem_limit_bytes=vmem_limit,
        ),
    )(w3, x3)

    # Pass 2: out = x * gate, tiled along HW (elementwise; partial tiles rely
    # on the masked writeback).
    return pl.pallas_call(
        _eca_scale_kernel,
        out_shape=jax.ShapeDtypeStruct((N, C, HW), x3.dtype),
        grid_spec=pltpu.PrefetchScalarGridSpec(
            num_scalar_prefetch=0,
            grid=(N, n_hw),
            in_specs=[
                pl.BlockSpec((1, C, 1), lambda n, h: (n, 0, 0)),
                pl.BlockSpec((1, C, hw_tile), lambda n, h: (n, 0, h)),
            ],
            out_specs=pl.BlockSpec((1, C, hw_tile), lambda n, h: (n, 0, h)),
        ),
        compiler_params=pltpu.CompilerParams(
            dimension_semantics=("parallel", "parallel"),
            vmem_limit_bytes=vmem_limit,
        ),
        input_output_aliases={1: 0} if donate_x else {},
    )(gate, x3)


def eca_forward(x, w, *, donate_x=False, max_block_bytes=None):
    """ECA forward.  x: (N, C, H, W); w: Conv1d(1,1,3,bias=False) weight (any
    shape reshapeable to (3,)).  Set donate_x=True only if x is donated."""
    N, C, H, W = x.shape
    HW = H * W
    itemsize = jnp.dtype(x.dtype).itemsize
    x3 = x.reshape(N, C, HW)
    w3 = jnp.asarray(w, dtype=jnp.float32).reshape(3)

    vmem_cap, n_cores = _tpu_vmem_and_cores()
    if max_block_bytes is None:
        max_block_bytes = min(_BLOCK_CAP, int(vmem_cap * 0.75) // _PIPE_MULT)
    row_bytes = _padded_row_bytes(C, HW, itemsize)

    if row_bytes <= max_block_bytes:
        out = _eca_fused(x3, w3, N, C, HW, row_bytes, max_block_bytes,
                         vmem_cap, n_cores, donate_x)
    else:
        out = _eca_split(x3, w3, N, C, HW, itemsize, max_block_bytes,
                         vmem_cap, donate_x)
    return out.reshape(N, C, H, W)


def eca_reference(x, w):
    """Pure-JAX reference (matches PyTorch eca_layer semantics)."""
    w3 = jnp.asarray(w, dtype=jnp.float32).reshape(3)
    avg = jnp.mean(x.astype(jnp.float32), axis=(2, 3))          # (N, C)
    pad = jnp.pad(avg, ((0, 0), (1, 1)))
    y = w3[0] * pad[:, :-2] + w3[1] * pad[:, 1:-1] + w3[2] * pad[:, 2:]
    gate = jax.nn.sigmoid(y)[:, :, None, None]
    return (x.astype(jnp.float32) * gate).astype(x.dtype)


if __name__ == "__main__":
    key = jax.random.PRNGKey(0)
    k1, k2, k3, k4 = jax.random.split(key, 4)

    # Deterministic Conv1d(1, 1, 3, bias=False) weight.
    w = jnp.array([0.6, -0.2, 0.3], dtype=jnp.float32)

    # 1) Small fused-path check.
    x1 = jax.random.normal(k1, (2, 4, 16, 16), dtype=jnp.float32)
    out1 = jax.block_until_ready(eca_forward(x1, w))
    assert jnp.allclose(out1, eca_reference(x1, w), atol=1e-5, rtol=1e-5), \
        "mismatch (small fused)"

    # 2) Module-default channel count, HW not a multiple of 128, batch count
    #    that can leave a partial last batch block (masked writeback path).
    x2 = jax.random.normal(k2, (3, 192, 7, 7), dtype=jnp.float32)
    out2 = jax.block_until_ready(eca_forward(x2, w))
    assert jnp.allclose(out2, eca_reference(x2, w), atol=1e-5, rtol=1e-5), \
        "mismatch (192-ch fused)"

    # 3) bf16 I/O: kernel multiplies x * gate in bf16, reference multiplies in
    #    f32 then casts -- must stay within ~1 ulp.
    x3_ = jax.random.normal(k3, (2, 32, 8, 8), dtype=jnp.float32).astype(jnp.bfloat16)
    out3 = jax.block_until_ready(eca_forward(x3_, w))
    assert jnp.allclose(out3.astype(jnp.float32),
                        eca_reference(x3_, w).astype(jnp.float32),
                        atol=5e-2, rtol=5e-2), "mismatch (bf16 fused)"

    # 4) Force the large-HW split path with a tiny block budget; HW=400 also
    #    exercises the partial-HW-tile masking in the pooling kernel.
    x4 = jax.random.normal(k4, (2, 8, 16, 25), dtype=jnp.float32)
    out4 = jax.block_until_ready(eca_forward(x4, w, max_block_bytes=4096))
    assert jnp.allclose(out4, eca_reference(x4, w), atol=1e-5, rtol=1e-5), \
        "mismatch (split path)"

    print("KERNEL_OK")
</pallas_src>

<mosaic_0001>
module attributes {stable_mosaic.version = 11 : i64} {
  func.func @_eca_fused_kernel(%arg0: i32, %arg1: memref<3xf32, #tpu.memory_space<smem>>, %arg2: memref<2x4x256xf32, #tpu.memory_space<vmem>>, %arg3: memref<2x4x256xf32, #tpu.memory_space<vmem>>) attributes {dimension_semantics = [#tpu.dimension_semantics<parallel>], iteration_bounds = array<i64: 1>, scalar_prefetch = 0 : i64, scratch_operands = 0 : i64, tpu.core_type = #tpu.core_type<tc>, window_params = [{transform_indices = @transform_0, window_bounds = array<i64: 3>}, {transform_indices = @transform_1, window_bounds = array<i64: 2, 4, 256>}, {transform_indices = @transform_2, window_bounds = array<i64: 2, 4, 256>}]} {
    %c0 = arith.constant 0 : index
    %c0_0 = arith.constant 0 : index
    %c0_1 = arith.constant 0 : index
    %0 = vector.load %arg2[%c0, %c0_0, %c0_1] : memref<2x4x256xf32, #tpu.memory_space<vmem>>, vector<2x4x256xf32>
    %cst = arith.constant dense<0.000000e+00> : vector<2x4xf32>
    %1 = vector.multi_reduction <add>, %0, %cst [2] : vector<2x4x256xf32> to vector<2x4xf32>
    %2 = vector.shape_cast %1 : vector<2x4xf32> to vector<2x4x1xf32>
    %cst_2 = arith.constant 3.906250e-03 : f32
    %3 = vector.broadcast %cst_2 : f32 to vector<2x4x1xf32>
    %4 = arith.mulf %2, %3 : vector<2x4x1xf32>
    %c0_3 = arith.constant 0 : index
    %5 = memref.load %arg1[%c0_3] : memref<3xf32, #tpu.memory_space<smem>>
    %c1 = arith.constant 1 : index
    %6 = memref.load %arg1[%c1] : memref<3xf32, #tpu.memory_space<smem>>
    %c2 = arith.constant 2 : index
    %7 = memref.load %arg1[%c2] : memref<3xf32, #tpu.memory_space<smem>>
    %cst_4 = arith.constant 0.000000e+00 : f32
    %8 = vector.broadcast %cst_4 : f32 to vector<2x1x1xf32>
    %9 = vector.extract_strided_slice %4 {offsets = [0, 0, 0], sizes = [2, 3, 1], strides = [1, 1, 1]} : vector<2x4x1xf32> to vector<2x3x1xf32>
    %10 = tpu.concatenate %8, %9 in 1 : vector<2x1x1xf32>, vector<2x3x1xf32> -> vector<2x4x1xf32>
    %11 = vector.extract_strided_slice %4 {offsets = [0, 1, 0], sizes = [2, 3, 1], strides = [1, 1, 1]} : vector<2x4x1xf32> to vector<2x3x1xf32>
    %12 = tpu.concatenate %11, %8 in 1 : vector<2x3x1xf32>, vector<2x1x1xf32> -> vector<2x4x1xf32>
    %13 = vector.broadcast %5 : f32 to vector<2x4x1xf32>
    %14 = arith.mulf %13, %10 : vector<2x4x1xf32>
    %15 = vector.broadcast %6 : f32 to vector<2x4x1xf32>
    %16 = arith.mulf %15, %4 : vector<2x4x1xf32>
    %17 = arith.addf %14, %16 : vector<2x4x1xf32>
    %18 = vector.broadcast %7 : f32 to vector<2x4x1xf32>
    %19 = arith.mulf %18, %12 : vector<2x4x1xf32>
    %20 = arith.addf %17, %19 : vector<2x4x1xf32>
    %21 = arith.negf %20 : vector<2x4x1xf32>
    %22 = math.exp %21 : vector<2x4x1xf32>
    %cst_5 = arith.constant 1.000000e+00 : f32
    %23 = vector.broadcast %cst_5 : f32 to vector<2x4x1xf32>
    %24 = arith.addf %23, %22 : vector<2x4x1xf32>
    %25 = arith.divf %23, %24 : vector<2x4x1xf32>
    %26 = vector.broadcast %25 : vector<2x4x1xf32> to vector<2x4x256xf32>
    %27 = arith.mulf %0, %26 : vector<2x4x256xf32>
    %c0_6 = arith.constant 0 : index
    %c0_7 = arith.constant 0 : index
    %c0_8 = arith.constant 0 : index
    %28 = vector.load %arg3[%c0_6, %c0_7, %c0_8] : memref<2x4x256xf32, #tpu.memory_space<vmem>>, vector<2x4x256xf32>
    tpu.vector_store %arg3[%c0_6, %c0_7, %c0_8], %27 {strides = array<i32>} : memref<2x4x256xf32, #tpu.memory_space<vmem>>, vector<2x4x256xf32>,
    return
  }
  func.func @transform_0(%arg0: i32) -> i32 {
    %c0_i32 = arith.constant 0 : i32
    %c0_i32_0 = arith.constant 0 : i32
    return %c0_i32 : i32
  }
  func.func @transform_1(%arg0: i32) -> (i32, i32, i32) {
    %c0_i32 = arith.constant 0 : i32
    %c0_i32_0 = arith.constant 0 : i32
    %c0_i32_1 = arith.constant 0 : i32
    return %arg0, %c0_i32, %c0_i32_0 : i32, i32, i32
  }
  func.func @transform_2(%arg0: i32) -> (i32, i32, i32) {
    %c0_i32 = arith.constant 0 : i32
    %c0_i32_0 = arith.constant 0 : i32
    %c0_i32_1 = arith.constant 0 : i32
    return %arg0, %c0_i32, %c0_i32_0 : i32, i32, i32
  }
}

</mosaic_0001>

<bundles_post_ra>
// kernel: tpu_custom_call.1
= control target key start
LH: loop header
LB: loop body
LE: loop exit
PB: predicated region body
PF: predicated region fallthrough
CT: control target
= control target key end

     0   :  { %7 = vsyncpa [#allocation5], 0  ;;  %s311_s0 = inlined_call_operand.hbm [shape: f32[3], index: 0, kind: input, shape index: {}]   ;;  %s312_s1 = inlined_call_operand.hbm [shape: f32[2,4,256], index: 1, kind: input, shape index: {}]   ;;  %s313_s2 = inlined_call_operand.hbm [shape: f32[2,4,256], index: 2, kind: output, shape index: {}]  }
   0x1   :  { %8 = vsyncpa [#allocation3], 0 }
   0x2   :  { %9 = vsyncpa [#allocation4], 0  ;;  %s171_s11 = scalar_lea.hbm %s311_s0, 16 }
   0x3   :  { %p172_p0 = scmp.ne.s32.totalorder %s311_s0, %s171_s11  ;;  %p175_p1 = scmp.lt.u32.totalorder %s171_s11, %s311_s0 }
   0x5   :  { %p177_p2 = pnand %p175_p1, %p172_p0 }
   0x7   :  { %180 = shalt.err (!%p177_p2)
}
   0x8   :  { %s231_s16 = smov [#allocation2]   ;;  %s232_s19 = smov [#allocation6]  }
   0x9   :  { %17 = dma.hbm_to_smem %s311_s0, 16, %s231_s16, [#allocation5]  }
   0xa   :  { %s23_s20 = sshll.u32 %s232_s19, 4  ;;  %s181_s23 = scalar_lea.hbm %s312_s1, 256  ;;  %s24_s20 = int_to_ptr.vmem [resolvable:$true] %s23_s20 }
   0xb   :  { %p182_p3 = scmp.ne.s32.totalorder %s312_s1, %s181_s23  ;;  %p185_p4 = scmp.lt.u32.totalorder %s181_s23, %s312_s1 }
   0xd   :  { %p187_p5 = pnand %p185_p4, %p182_p3 }
   0xf   :  { %190 = shalt.err (!%p187_p5)
}
  0x10   :  { %s191_s28 = scalar_lea.vmem %s24_s20, 256  ;;  %p196_p7 = scmp.lt.s32.totalorder %s24_s20, %s24_s20 }
  0x11   :  { %p192_p6 = scmp.ne.s32.totalorder %s24_s20, %s191_s28  ;;  %p197_p8 = scmp.lt.s32.totalorder %s191_s28, %s191_s28 }
  0x13   :  { %p198_p9 = por %p197_p8, %p196_p7 }
  0x15   :  { %p199_p10 = pnand %p198_p9, %p192_p6 }
  0x17   :  { %202 = shalt.err (!%p199_p10)
}
  0x18   :  { %s233_s0 = smov 128   ;;  %s234_s29 = smov 8  }
  0x19   :  { %29 = dma.hbm_to_vmem [thread:$0]  %s312_s1, 256, %s24_s20, [#allocation3], %s233_s0, %s233_s0, %s234_s29  }
  0x1a   :  { %225 = dma.done.wait [#allocation5], 16  }
  0x1b   :  { %226 = vsyncadd [#allocation5], 4294967280 }
  0x1c   :  { %227 = dma.done.wait [#allocation3], 256  }
  0x1d   :  { %228 = vsyncadd [#allocation3], 4294967040 }
  0x1e   :  { %36 = sfence }
  0x1f   :  { %v280_v0 = vld [vmem:[#allocation6] sm:$0xff]  ;;  %vm45_vm0 = vcmask 1043456   ;;  %v282_v1 = vld [vmem:[#allocation6 + $0x8] sm:$0xff]  ;;  %v235_v10 = vmov 0   ;;  %s58_s1 = sld [smem:[#allocation2]]  ;;  %s148_s4 = sld [smem:[#allocation2 + $0x1]]  ;;  %v113_v46 = vlaneseq }
  0x20   :  { %v41_v2 = vcombine.high %v280_v0, %v280_v0  ;;  %v46_v3 = vsel %vm45_vm0, %v280_v0, 0.0  ;;  %v42_v4 = vcombine.high %v282_v1, %v282_v1  ;;  %v51_v6 = vsel %vm45_vm0, %v282_v1, 0.0  ;;  %159 = vset.pattern.permute.xlu1 %v235_v10  ;;  %160 = vset.pattern.permute.xlu0 %v235_v10  ;;  %s149_s5 = sld [smem:[#allocation2 + $0x2]]  ;;  %s237_s6 = smov [#allocation7]  }
  0x21   :  { %vm67_vm1 = vcmask 1040384   ;;  %vm74_vm2 = vcmask 1042432   ;;  %v236_v44 = vmov 839922192   ;;  %v114_v48 = vshrl.u32 %v113_v46, 7  ;;  %s135_s7 = sshll.u32 %s237_s6, 4  ;;  %s136_s7 = int_to_ptr.vmem [resolvable:$true] %s135_s7 }
  0x22   :  { %v47_v5 = vsel %vm45_vm0, %v41_v2, 0.0  ;;  %v52_v7 = vsel %vm45_vm0, %v42_v4, 0.0  ;;  %v111_v45 = vunpack.c.l.s4 %v236_v44  ;;  %s203_s8 = scalar_lea.vmem %s136_s7, 256  ;;  %p208_p12 = scmp.lt.s32.totalorder %s136_s7, %s136_s7 }
  0x23   :  { %v48_v8 = vadd.f32 %v47_v5, %v46_v3  ;;  %v53_v9 = vadd.f32 %v52_v7, %v51_v6  ;;  %p204_p11 = scmp.ne.s32.totalorder %s136_s7, %s203_s8  ;;  %p209_p13 = scmp.lt.s32.totalorder %s203_s8, %s203_s8 }
  0x24   :  { %v112_v47 = vunpack.c.0.s8 %v111_v45 }
  0x25   :  { %49 = vadd.xlane.f32.xlu0 %v48_v8  ;;  %v77_v13 = vstv %s58_s1  ;;  %v80_v14 = vstv %s148_s4  ;;  %p210_p0 = por %p209_p13, %p208_p12 }
  0x26   :  { %v85_v18 = vstv %s149_s5  ;;  %v115_v49 = vsub.s32 %v112_v47, %v114_v48 }
  0x27   :  { %p211_p1 = pnand %p210_p0, %p204_p11 }
  0x29   :  { %54 = vadd.xlane.f32.xlu0 %v53_v9 }
  0xb2   :  { %v50_v11 = vpop.xlane.xlu0 %49 }
  0xb3   :  { %v56_v12 = vmul.f32 0.00390625, %v50_v11 }
  0xb5   :  { %v63_v15 = vrot.slane %v56_v12, 7  ;;  %v70_v16 = vrot.slane %v56_v12, 1  ;;  %v81_v23 = vmul.f32 %v80_v14, %v56_v12 }
  0xb6   :  { %v55_v17 = vpop.xlane.xlu0 %54 }
  0xb7   :  { %v68_v19 = vsel %vm67_vm1, 0.0, %v63_v15  ;;  %v75_v20 = vsel %vm74_vm2, %v70_v16, 0.0  ;;  %v57_v21 = vmul.f32 0.00390625, %v55_v17 }
  0xb8   :  { %v78_v22 = vmul.f32 %v77_v13, %v68_v19  ;;  %v86_v27 = vmul.f32 %v85_v18, %v75_v20 }
  0xb9   :  { %v64_v24 = vrot.slane %v57_v21, 7  ;;  %v71_v25 = vrot.slane %v57_v21, 1  ;;  %v82_v32 = vmul.f32 %v80_v14, %v57_v21 }
  0xba   :  { %v83_v26 = vadd.f32 %v81_v23, %v78_v22 }
  0xbb   :  { %v69_v28 = vsel %vm67_vm1, 0.0, %v64_v24  ;;  %v76_v29 = vsel %vm74_vm2, %v71_v25, 0.0 }
  0xbc   :  { %v88_v30 = vadd.f32 %v86_v27, %v83_v26  ;;  %v79_v31 = vmul.f32 %v77_v13, %v69_v28  ;;  %v87_v35 = vmul.f32 %v85_v18, %v76_v29 }
  0xbe   :  { %v150_v33 = vmul.f32 -1.442695, %v88_v30  ;;  %v84_v34 = vadd.f32 %v82_v32, %v79_v31 }
  0xc0   :  { %163 = vpow2.f32 %v150_v33  ;;  %v89_v36 = vadd.f32 %v87_v35, %v84_v34 }
  0xc2   :  { %v151_v37 = vmul.f32 -1.442695, %v89_v36 }
  0xc4   :  { %165 = vpow2.f32 %v151_v37 }
  0xca   :  { %v164_v38 = vpop.eup %163 }
  0xcb   :  { %v96_v39 = vadd.f32 1.0, %v164_v38 }
  0xcd   :  { %167 = vrcp.f32 %v96_v39 }
  0xce   :  { %v166_v40 = vpop.eup %165 }
  0xcf   :  { %v97_v41 = vadd.f32 1.0, %v166_v40 }
  0xd1   :  { %169 = vrcp.f32 %v97_v41 }
  0xd7   :  { %v168_v42 = vpop.eup %167 }
  0xd8   :  { %104 = vperm.xlu1 %159, %v168_v42  }
  0xdb   :  { %v170_v43 = vpop.eup %169 }
  0xdc   :  { %108 = vperm.xlu1 %159, %v170_v43  }
 0x157   :  { %v105_v50 = vpop.permute.xlu1 %104 }
 0x158   :  { %v116_v51 = vrot.slane %v105_v50, %v115_v49 }
 0x15a   :  { %v126_v52 = vmul.f32 %v116_v51, %v280_v0 }
 0x15b   :  { %v109_v53 = vpop.permute.xlu1 %108 }
 0x15c   :  { %v123_v54 = vrot.slane %v109_v53, %v115_v49  ;;  %128 = vst [vmem:[#allocation7] sm:$0xff] %v126_v52 }
 0x15e   :  { %v127_v55 = vmul.f32 %v123_v54, %v282_v1 }
 0x160   :  { %129 = vst [vmem:[#allocation7 + $0x8] sm:$0xff] %v127_v55 }
 0x161   :  { %214 = shalt.err (!%p211_p1)
}
 0x162   :  { %s215_s11 = scalar_lea.hbm %s313_s2, 256 }
 0x163   :  { %p216_p2 = scmp.ne.s32.totalorder %s313_s2, %s215_s11  ;;  %p219_p3 = scmp.lt.u32.totalorder %s215_s11, %s313_s2 }
 0x165   :  { %p221_p4 = pnand %p219_p3, %p216_p2 }
 0x167   :  { %224 = shalt.err (!%p221_p4)
}
 0x168   :  { %141 = dma.vmem_to_hbm [thread:$0]  %s136_s7, 256, %s313_s2, [#allocation4], %s233_s0, %s233_s0, %s234_s29  }
 0x169   :  { %229 = dma.done.wait [#allocation4], 256  }
 0x16a   :  { %230 = vsyncadd [#allocation4], 4294967040 }
 0x16b   :  { %145 = vsyncpa [#allocation3], 1 }
 0x16c   :  { %146 = vsyncpa [#allocation4], 1 }
 0x16d   :  { %147 = vsyncpa [#allocation5], 1 }

</bundles_post_ra>
